<compile_context>
chip_gen: v6e
topology: v6e:2x2x1
jax: 0.10.0
libtpu: 0.0.40
codegen_flags: <defaults>
</compile_context>

<pallas_src>
import functools

import jax
import jax.numpy as jnp
from jax.experimental import pallas as pl
from jax.experimental.pallas import tpu as pltpu

HIDDEN = 64
N_HEADS = 4
HEAD_DIM = HIDDEN // N_HEADS
LN_EPS = 1e-5
DEFAULT_TB = 16            # max batch elements per grid step (16 * 8 levels = 128 rows)


def _srm_kernel(emb_ref, ds_ref, mask_ref, w2_ref, wqkv_ref, wo_ref, misc_ref,
                out_ref):
    M = out_ref.shape[0]                    # TB * n_levels rows in this block
    H = HIDDEN
    HH = HIDDEN // 2

    x = emb_ref[...]                        # (M, H)
    ds = ds_ref[...]                        # (M, 2): [distance, strength]
    d = ds[:, 0:1]
    s = ds[:, 1:2]
    mask = mask_ref[...]                    # (M, M) 0/1 block-diagonal, grid-invariant
    misc = misc_ref[...]                    # (8, 3*H) packed small params

    w1 = misc[0:1, 0:HH]                    # Linear(1, H/2) weight (row vector)
    b1 = misc[0:1, HH:2 * HH]
    b2 = misc[1:2, 0:H]
    ln_g = misc[1:2, H:2 * H]
    ln_b = misc[1:2, 2 * H:3 * H]
    wg = misc[2:3, 0:H]                     # Linear(1, H) gate weight
    bg = misc[2:3, H:2 * H]
    bo = misc[2:3, 2 * H:3 * H]             # out_proj bias
    bqkv = misc[3:4, :]                     # (1, 3*H); q-part pre-scaled by 1/sqrt(dh)

    # --- distance encoder: Linear(1,H/2) -> ReLU -> Linear(H/2,H) -> LayerNorm ---
    h1 = jnp.maximum(d * w1 + b1, 0.0)                                        # (M, H/2)
    h2 = jnp.dot(h1, w2_ref[...], preferred_element_type=jnp.float32) + b2    # (M, H)
    mu = jnp.mean(h2, axis=-1, keepdims=True)
    var = jnp.mean((h2 - mu) ** 2, axis=-1, keepdims=True)
    de = (h2 - mu) * jax.lax.rsqrt(var + LN_EPS) * ln_g + ln_b

    x = x + de

    # --- strength gate: Linear(1, H) -> Sigmoid ---
    x = x * jax.nn.sigmoid(s * wg + bg)

    # --- multi-head self-attention (Q = K = V = x), fused QKV projection ---
    qkv = jnp.dot(x, wqkv_ref[...], preferred_element_type=jnp.float32) + bqkv  # (M, 3H)
    q = qkv[:, 0:H]
    k = qkv[:, H:2 * H]
    v = qkv[:, 2 * H:3 * H]

    wo = wo_ref[...]                                                          # (H, H)
    ones_col = jnp.ones((M, 1), jnp.float32)                                  # row-sum via MXU
    attn = x + bo                           # residual + out_proj bias, accumulate heads onto it
    qk_dims = (((1,), (1,)), ((), ()))      # contract last dims: q @ k^T, no transpose op
    for h in range(N_HEADS):                # static unroll over 4 heads
        sl = slice(h * HEAD_DIM, (h + 1) * HEAD_DIM)
        logits = jax.lax.dot_general(q[:, sl], k[:, sl], qk_dims,
                                     preferred_element_type=jnp.float32)       # (M, M)
        m = jnp.max(logits, axis=-1, keepdims=True)
        p = jnp.exp(logits - m) * mask                                         # unnormalized
        denom = jnp.dot(p, ones_col, preferred_element_type=jnp.float32)       # (M, 1) on MXU
        head = jnp.dot(p, v[:, sl], preferred_element_type=jnp.float32)        # (M, dh)
        head = head * pl.reciprocal(denom, approx=False)                       # deferred softmax
        # Accumulate output projection per head (no lane concatenate).
        attn = attn + jnp.dot(head, wo[sl, :], preferred_element_type=jnp.float32)

    out_ref[...] = attn


def spatial_relationship_forward(emb, dist, strn, packed_params, *, tb=DEFAULT_TB):
    """emb: (B, L, H), dist/strn: (B, L, 1). Returns (B, L, H)."""
    B, L, H = emb.shape
    assert H == HIDDEN
    w2, wqkv, wo, misc = packed_params

    # Size tb so the "parallel" grid axis has >= 2 balanced steps whenever B >= 2
    # (v7x has 2 TensorCores; a single-step grid would idle one of them).
    tb = max(1, min(tb, B))
    if B >= 2:
        tb = min(tb, -(-B // 2))
    assert (tb * L) % 8 == 0, "rows per block must be a multiple of 8"
    n_blocks = -(-B // tb)                  # ceil(B / tb)
    Bp = n_blocks * tb
    M_BLK = tb * L

    # Flatten (batch, level) into rows; pad batch up to a multiple of tb with zeros
    # (padded rows are isolated by the block-diagonal mask and sliced off below).
    emb_f = emb.reshape(B * L, H)
    ds_f = jnp.concatenate([dist.reshape(B * L, 1), strn.reshape(B * L, 1)], axis=1)
    if Bp != B:
        padr = (Bp - B) * L
        emb_f = jnp.concatenate([emb_f, jnp.zeros((padr, H), emb_f.dtype)], axis=0)
        ds_f = jnp.concatenate([ds_f, jnp.zeros((padr, 2), ds_f.dtype)], axis=0)

    # Grid-invariant block-diagonal 0/1 mask: row r attends only within its own
    # batch element (r // L). Built once here instead of per-step iotas in-kernel.
    rid = jnp.arange(M_BLK, dtype=jnp.int32) // L
    mask = (rid[:, None] == rid[None, :]).astype(jnp.float32)                  # (M_BLK, M_BLK)

    def rep(shape):                         # replicated (grid-resident) weight spec
        return pl.BlockSpec(shape, lambda i: (0, 0))

    # Advisory cost estimate (helps XLA schedule the wrapper-side reshape/pad/slice).
    Mb, dh = M_BLK, HEAD_DIM
    flops_blk = (2 * Mb * (H // 2) + 2 * Mb * (H // 2) * H + 12 * Mb * H
                 + 2 * Mb * H * 3 * H
                 + N_HEADS * (4 * Mb * Mb * dh + 6 * Mb * Mb + 2 * Mb * dh * H + 2 * Mb * H))
    trans_blk = Mb * H + N_HEADS * (Mb * Mb + Mb)
    bytes_acc = 4 * (2 * Bp * L * H + Bp * L * 2 + M_BLK * M_BLK
                     + w2.size + wqkv.size + wo.size + misc.size)
    cost = pl.CostEstimate(flops=int(n_blocks * flops_blk),
                           transcendentals=int(n_blocks * trans_blk),
                           bytes_accessed=int(bytes_acc))

    out = pl.pallas_call(
        _srm_kernel,
        out_shape=jax.ShapeDtypeStruct((Bp * L, H), jnp.float32),
        grid=(n_blocks,),
        in_specs=[
            pl.BlockSpec((M_BLK, H), lambda i: (i, 0)),   # embeddings rows
            pl.BlockSpec((M_BLK, 2), lambda i: (i, 0)),   # [distance, strength]
            rep(mask.shape),                              # block-diagonal mask (invariant)
            rep(w2.shape), rep(wqkv.shape), rep(wo.shape), rep(misc.shape),
        ],
        out_specs=pl.BlockSpec((M_BLK, H), lambda i: (i, 0)),
        compiler_params=pltpu.CompilerParams(dimension_semantics=("parallel",)),
        cost_estimate=cost,
    )(emb_f, ds_f, mask, w2, wqkv, wo, misc)

    return out[:B * L].reshape(B, L, H)


def make_params(key):
    """Deterministic synthetic parameters (shapes from SpatialRelationshipModule.__init__)."""
    ks = jax.random.split(key, 12)
    f32 = jnp.float32
    w1 = 0.1 * jax.random.normal(ks[0], (1, HIDDEN // 2), f32)        # Linear(1, 32) weight^T
    b1 = 0.1 * jax.random.normal(ks[1], (1, HIDDEN // 2), f32)
    w2 = 0.1 * jax.random.normal(ks[2], (HIDDEN // 2, HIDDEN), f32)   # Linear(32, 64) weight^T
    b2 = 0.1 * jax.random.normal(ks[3], (1, HIDDEN), f32)
    ln_g = jnp.ones((1, HIDDEN), f32)
    ln_b = jnp.zeros((1, HIDDEN), f32)
    wg = 0.1 * jax.random.normal(ks[4], (1, HIDDEN), f32)             # Linear(1, 64) weight^T
    bg = 0.1 * jax.random.normal(ks[5], (1, HIDDEN), f32)
    wq = 0.1 * jax.random.normal(ks[6], (HIDDEN, HIDDEN), f32)        # in_proj q weight^T
    wk = 0.1 * jax.random.normal(ks[7], (HIDDEN, HIDDEN), f32)
    wv = 0.1 * jax.random.normal(ks[8], (HIDDEN, HIDDEN), f32)
    bq = 0.1 * jax.random.normal(ks[9], (1, HIDDEN), f32)
    bk = 0.1 * jax.random.normal(ks[10], (1, HIDDEN), f32)
    bv = 0.1 * jax.random.normal(ks[11], (1, HIDDEN), f32)
    wo = 0.1 * jax.random.normal(jax.random.fold_in(key, 99), (HIDDEN, HIDDEN), f32)  # out_proj^T
    bo = 0.1 * jax.random.normal(jax.random.fold_in(key, 100), (1, HIDDEN), f32)
    return [w1, b1, w2, b2, ln_g, ln_b, wg, bg, wq, bq, wk, bk, wv, bv, wo, bo]


def pack_params(params):
    """Fuse QKV (with folded 1/sqrt(head_dim)) and pack small vectors into one slab."""
    (w1, b1, w2, b2, ln_g, ln_b, wg, bg,
     wq, bq, wk, bk, wv, bv, wo, bo) = params
    scale = 1.0 / (HEAD_DIM ** 0.5)                               # 0.25, exact
    wqkv = jnp.concatenate([wq * scale, wk, wv], axis=1)          # (64, 192)
    bqkv = jnp.concatenate([bq * scale, bk, bv], axis=1)          # (1, 192)
    H, HH = HIDDEN, HIDDEN // 2
    misc = jnp.zeros((8, 3 * H), jnp.float32)
    misc = misc.at[0, 0:HH].set(w1[0])
    misc = misc.at[0, HH:2 * HH].set(b1[0])
    misc = misc.at[1, 0:H].set(b2[0])
    misc = misc.at[1, H:2 * H].set(ln_g[0])
    misc = misc.at[1, 2 * H:3 * H].set(ln_b[0])
    misc = misc.at[2, 0:H].set(wg[0])
    misc = misc.at[2, H:2 * H].set(bg[0])
    misc = misc.at[2, 2 * H:3 * H].set(bo[0])
    misc = misc.at[3, :].set(bqkv[0])
    return [w2, wqkv, wo, misc]


def reference_forward(emb, dist, strn, params):
    """Pure-JAX reference replicating the PyTorch forward (eval mode)."""
    (w1, b1, w2, b2, ln_g, ln_b, wg, bg,
     wq, bq, wk, bk, wv, bv, wo, bo) = params
    h1 = jnp.maximum(dist * w1 + b1, 0.0)                         # (B, L, 32)
    h2 = jnp.einsum("blk,kh->blh", h1, w2) + b2
    mu = jnp.mean(h2, axis=-1, keepdims=True)
    var = jnp.mean((h2 - mu) ** 2, axis=-1, keepdims=True)
    de = (h2 - mu) * jax.lax.rsqrt(var + LN_EPS) * ln_g + ln_b
    x = emb + de
    g = jax.nn.sigmoid(strn * wg + bg)
    x = x * g

    q = jnp.einsum("blh,hk->blk", x, wq) + bq
    k = jnp.einsum("blh,hk->blk", x, wk) + bk
    v = jnp.einsum("blh,hk->blk", x, wv) + bv
    B, L, H = x.shape
    qh = q.reshape(B, L, N_HEADS, HEAD_DIM)
    kh = k.reshape(B, L, N_HEADS, HEAD_DIM)
    vh = v.reshape(B, L, N_HEADS, HEAD_DIM)
    logits = jnp.einsum("bqnd,bknd->bnqk", qh, kh) / (HEAD_DIM ** 0.5)
    p = jax.nn.softmax(logits, axis=-1)
    o = jnp.einsum("bnqk,bknd->bqnd", p, vh).reshape(B, L, H)
    attn = jnp.einsum("blh,hk->blk", o, wo) + bo
    return attn + x


if __name__ == "__main__":
    L = 8
    key = jax.random.PRNGKey(0)
    k_emb, k_d, k_s, k_p = jax.random.split(key, 4)
    raw_params = make_params(k_p)
    packed = pack_params(raw_params)

    # Small canonical check (batch=2, levels=8, hidden=64) — two balanced grid steps.
    B = 2
    emb = jax.random.normal(k_emb, (B, L, HIDDEN), jnp.float32)
    dist = jax.random.normal(k_d, (B, L, 1), jnp.float32)
    strn = jax.random.normal(k_s, (B, L, 1), jnp.float32)
    out = jax.block_until_ready(spatial_relationship_forward(emb, dist, strn, packed))
    ref = jax.block_until_ready(reference_forward(emb, dist, strn, raw_params))
    assert out.shape == (B, L, HIDDEN)
    assert jnp.allclose(out, ref, atol=1e-4, rtol=1e-4), float(jnp.max(jnp.abs(out - ref)))

    # Second check: multi-element blocks (B=20 -> tb=10, two exact 80-row blocks).
    B2 = 20
    ka, kb, kc = jax.random.split(jax.random.PRNGKey(1), 3)
    emb2 = jax.random.normal(ka, (B2, L, HIDDEN), jnp.float32)
    dist2 = jax.random.normal(kb, (B2, L, 1), jnp.float32)
    strn2 = jax.random.normal(kc, (B2, L, 1), jnp.float32)
    out2 = jax.block_until_ready(spatial_relationship_forward(emb2, dist2, strn2, packed))
    ref2 = jax.block_until_ready(reference_forward(emb2, dist2, strn2, raw_params))
    assert jnp.allclose(out2, ref2, atol=1e-4, rtol=1e-4), float(jnp.max(jnp.abs(out2 - ref2)))

    # Third check: batch padding path (B=35 -> tb=16, blocks of 16/16/3+pad).
    B3 = 35
    kd, ke, kf = jax.random.split(jax.random.PRNGKey(2), 3)
    emb3 = jax.random.normal(kd, (B3, L, HIDDEN), jnp.float32)
    dist3 = jax.random.normal(ke, (B3, L, 1), jnp.float32)
    strn3 = jax.random.normal(kf, (B3, L, 1), jnp.float32)
    out3 = jax.block_until_ready(spatial_relationship_forward(emb3, dist3, strn3, packed))
    ref3 = jax.block_until_ready(reference_forward(emb3, dist3, strn3, raw_params))
    assert jnp.allclose(out3, ref3, atol=1e-4, rtol=1e-4), float(jnp.max(jnp.abs(out3 - ref3)))

    print("KERNEL_OK")
</pallas_src>

<mosaic_0001>
module attributes {stable_mosaic.version = 11 : i64} {
  func.func @_srm_kernel(%arg0: i32, %arg1: memref<8x64xf32, #tpu.memory_space<vmem>>, %arg2: memref<8x2xf32, #tpu.memory_space<vmem>>, %arg3: memref<8x8xf32, #tpu.memory_space<vmem>>, %arg4: memref<32x64xf32, #tpu.memory_space<vmem>>, %arg5: memref<64x192xf32, #tpu.memory_space<vmem>>, %arg6: memref<64x64xf32, #tpu.memory_space<vmem>>, %arg7: memref<8x192xf32, #tpu.memory_space<vmem>>, %arg8: memref<8x64xf32, #tpu.memory_space<vmem>>) attributes {dimension_semantics = [#tpu.dimension_semantics<parallel>], iteration_bounds = array<i64: 2>, scalar_prefetch = 0 : i64, scratch_operands = 0 : i64, tpu.core_type = #tpu.core_type<tc>, window_params = [{transform_indices = @transform_0, window_bounds = array<i64: 8, 64>}, {transform_indices = @transform_1, window_bounds = array<i64: 8, 2>}, {pipeline_mode = #tpu.pipeline_mode<synchronous>, transform_indices = @transform_2, window_bounds = array<i64: 8, 8>}, {pipeline_mode = #tpu.pipeline_mode<synchronous>, transform_indices = @transform_3, window_bounds = array<i64: 32, 64>}, {pipeline_mode = #tpu.pipeline_mode<synchronous>, transform_indices = @transform_4, window_bounds = array<i64: 64, 192>}, {pipeline_mode = #tpu.pipeline_mode<synchronous>, transform_indices = @transform_5, window_bounds = array<i64: 64, 64>}, {pipeline_mode = #tpu.pipeline_mode<synchronous>, transform_indices = @transform_6, window_bounds = array<i64: 8, 192>}, {transform_indices = @transform_7, window_bounds = array<i64: 8, 64>}]} {
    %c0 = arith.constant 0 : index
    %c0_0 = arith.constant 0 : index
    %0 = vector.load %arg1[%c0, %c0_0] : memref<8x64xf32, #tpu.memory_space<vmem>>, vector<8x64xf32>
    %c0_1 = arith.constant 0 : index
    %c0_2 = arith.constant 0 : index
    %1 = vector.load %arg2[%c0_1, %c0_2] : memref<8x2xf32, #tpu.memory_space<vmem>>, vector<8x2xf32>
    %2 = vector.extract_strided_slice %1 {offsets = [0, 0], sizes = [8, 1], strides = [1, 1]} : vector<8x2xf32> to vector<8x1xf32>
    %3 = vector.extract_strided_slice %1 {offsets = [0, 1], sizes = [8, 1], strides = [1, 1]} : vector<8x2xf32> to vector<8x1xf32>
    %c0_3 = arith.constant 0 : index
    %c0_4 = arith.constant 0 : index
    %4 = vector.load %arg3[%c0_3, %c0_4] : memref<8x8xf32, #tpu.memory_space<vmem>>, vector<8x8xf32>
    %c0_5 = arith.constant 0 : index
    %c0_6 = arith.constant 0 : index
    %5 = vector.load %arg7[%c0_5, %c0_6] : memref<8x192xf32, #tpu.memory_space<vmem>>, vector<8x192xf32>
    %6 = vector.extract_strided_slice %5 {offsets = [0, 0], sizes = [1, 32], strides = [1, 1]} : vector<8x192xf32> to vector<1x32xf32>
    %7 = vector.extract_strided_slice %5 {offsets = [0, 32], sizes = [1, 32], strides = [1, 1]} : vector<8x192xf32> to vector<1x32xf32>
    %8 = vector.extract_strided_slice %5 {offsets = [1, 0], sizes = [1, 64], strides = [1, 1]} : vector<8x192xf32> to vector<1x64xf32>
    %9 = vector.extract_strided_slice %5 {offsets = [1, 64], sizes = [1, 64], strides = [1, 1]} : vector<8x192xf32> to vector<1x64xf32>
    %10 = vector.extract_strided_slice %5 {offsets = [1, 128], sizes = [1, 64], strides = [1, 1]} : vector<8x192xf32> to vector<1x64xf32>
    %11 = vector.extract_strided_slice %5 {offsets = [2, 0], sizes = [1, 64], strides = [1, 1]} : vector<8x192xf32> to vector<1x64xf32>
    %12 = vector.extract_strided_slice %5 {offsets = [2, 64], sizes = [1, 64], strides = [1, 1]} : vector<8x192xf32> to vector<1x64xf32>
    %13 = vector.extract_strided_slice %5 {offsets = [2, 128], sizes = [1, 64], strides = [1, 1]} : vector<8x192xf32> to vector<1x64xf32>
    %14 = vector.extract_strided_slice %5 {offsets = [3, 0], sizes = [1, 192], strides = [1, 1]} : vector<8x192xf32> to vector<1x192xf32>
    %15 = vector.broadcast %2 : vector<8x1xf32> to vector<8x32xf32>
    %16 = vector.broadcast %6 : vector<1x32xf32> to vector<8x32xf32>
    %17 = arith.mulf %15, %16 : vector<8x32xf32>
    %18 = vector.broadcast %7 : vector<1x32xf32> to vector<8x32xf32>
    %19 = arith.addf %17, %18 : vector<8x32xf32>
    %cst = arith.constant 0.000000e+00 : f32
    %20 = vector.broadcast %cst : f32 to vector<8x32xf32>
    %21 = arith.maximumf %19, %20 : vector<8x32xf32>
    %c0_7 = arith.constant 0 : index
    %c0_8 = arith.constant 0 : index
    %22 = vector.load %arg4[%c0_7, %c0_8] : memref<32x64xf32, #tpu.memory_space<vmem>>, vector<32x64xf32>
    %cst_9 = arith.constant dense<0.000000e+00> : vector<8x64xf32>
    %23 = tpu.matmul %21, %22, %cst_9 {dimension_numbers = #tpu.dot_dimension_numbers<[1], [0], [0], [1], [0, 0, 1, 1], [], []>} : vector<8x32xf32>, vector<32x64xf32>, vector<8x64xf32> -> vector<8x64xf32>
    %24 = vector.broadcast %8 : vector<1x64xf32> to vector<8x64xf32>
    %25 = arith.addf %23, %24 : vector<8x64xf32>
    %cst_10 = arith.constant dense<0.000000e+00> : vector<8xf32>
    %26 = vector.multi_reduction <add>, %25, %cst_10 [1] : vector<8x64xf32> to vector<8xf32>
    %27 = vector.shape_cast %26 : vector<8xf32> to vector<8x1xf32>
    %cst_11 = arith.constant 6.400000e+01 : f32
    %28 = vector.broadcast %cst_11 : f32 to vector<8x1xf32>
    %29 = arith.divf %27, %28 : vector<8x1xf32>
    %30 = vector.broadcast %29 : vector<8x1xf32> to vector<8x64xf32>
    %31 = arith.subf %25, %30 : vector<8x64xf32>
    %32 = arith.mulf %31, %31 : vector<8x64xf32>
    %cst_12 = arith.constant dense<0.000000e+00> : vector<8xf32>
    %33 = vector.multi_reduction <add>, %32, %cst_12 [1] : vector<8x64xf32> to vector<8xf32>
    %34 = vector.shape_cast %33 : vector<8xf32> to vector<8x1xf32>
    %cst_13 = arith.constant 6.400000e+01 : f32
    %35 = vector.broadcast %cst_13 : f32 to vector<8x1xf32>
    %36 = arith.divf %34, %35 : vector<8x1xf32>
    %37 = vector.broadcast %29 : vector<8x1xf32> to vector<8x64xf32>
    %38 = arith.subf %25, %37 : vector<8x64xf32>
    %cst_14 = arith.constant 9.99999974E-6 : f32
    %39 = vector.broadcast %cst_14 : f32 to vector<8x1xf32>
    %40 = arith.addf %36, %39 : vector<8x1xf32>
    %41 = math.rsqrt %40 : vector<8x1xf32>
    %42 = vector.broadcast %41 : vector<8x1xf32> to vector<8x64xf32>
    %43 = arith.mulf %38, %42 : vector<8x64xf32>
    %44 = vector.broadcast %9 : vector<1x64xf32> to vector<8x64xf32>
    %45 = arith.mulf %43, %44 : vector<8x64xf32>
    %46 = vector.broadcast %10 : vector<1x64xf32> to vector<8x64xf32>
    %47 = arith.addf %45, %46 : vector<8x64xf32>
    %48 = arith.addf %0, %47 : vector<8x64xf32>
    %49 = vector.broadcast %3 : vector<8x1xf32> to vector<8x64xf32>
    %50 = vector.broadcast %11 : vector<1x64xf32> to vector<8x64xf32>
    %51 = arith.mulf %49, %50 : vector<8x64xf32>
    %52 = vector.broadcast %12 : vector<1x64xf32> to vector<8x64xf32>
    %53 = arith.addf %51, %52 : vector<8x64xf32>
    %54 = arith.negf %53 : vector<8x64xf32>
    %55 = math.exp %54 : vector<8x64xf32>
    %cst_15 = arith.constant 1.000000e+00 : f32
    %56 = vector.broadcast %cst_15 : f32 to vector<8x64xf32>
    %57 = arith.addf %56, %55 : vector<8x64xf32>
    %58 = arith.divf %56, %57 : vector<8x64xf32>
    %59 = arith.mulf %48, %58 : vector<8x64xf32>
    %c0_16 = arith.constant 0 : index
    %c0_17 = arith.constant 0 : index
    %60 = vector.load %arg5[%c0_16, %c0_17] : memref<64x192xf32, #tpu.memory_space<vmem>>, vector<64x192xf32>
    %cst_18 = arith.constant dense<0.000000e+00> : vector<8x192xf32>
    %61 = tpu.matmul %59, %60, %cst_18 {dimension_numbers = #tpu.dot_dimension_numbers<[1], [0], [0], [1], [0, 0, 1, 1], [], []>} : vector<8x64xf32>, vector<64x192xf32>, vector<8x192xf32> -> vector<8x192xf32>
    %62 = vector.broadcast %14 : vector<1x192xf32> to vector<8x192xf32>
    %63 = arith.addf %61, %62 : vector<8x192xf32>
    %64 = vector.extract_strided_slice %63 {offsets = [0, 0], sizes = [8, 64], strides = [1, 1]} : vector<8x192xf32> to vector<8x64xf32>
    %65 = vector.extract_strided_slice %63 {offsets = [0, 64], sizes = [8, 64], strides = [1, 1]} : vector<8x192xf32> to vector<8x64xf32>
    %66 = vector.extract_strided_slice %63 {offsets = [0, 128], sizes = [8, 64], strides = [1, 1]} : vector<8x192xf32> to vector<8x64xf32>
    %c0_19 = arith.constant 0 : index
    %c0_20 = arith.constant 0 : index
    %67 = vector.load %arg6[%c0_19, %c0_20] : memref<64x64xf32, #tpu.memory_space<vmem>>, vector<64x64xf32>
    %cst_21 = arith.constant 1.000000e+00 : f32
    %68 = vector.broadcast %cst_21 : f32 to vector<8x1xf32>
    %69 = vector.broadcast %13 : vector<1x64xf32> to vector<8x64xf32>
    %70 = arith.addf %59, %69 : vector<8x64xf32>
    %71 = vector.extract_strided_slice %64 {offsets = [0, 0], sizes = [8, 16], strides = [1, 1]} : vector<8x64xf32> to vector<8x16xf32>
    %72 = vector.extract_strided_slice %65 {offsets = [0, 0], sizes = [8, 16], strides = [1, 1]} : vector<8x64xf32> to vector<8x16xf32>
    %cst_22 = arith.constant dense<0.000000e+00> : vector<8x8xf32>
    %73 = tpu.matmul %71, %72, %cst_22 {dimension_numbers = #tpu.dot_dimension_numbers<[1], [1], [0], [0], [0, 0, 1, 0], [], []>} : vector<8x16xf32>, vector<8x16xf32>, vector<8x8xf32> -> vector<8x8xf32>
    %cst_23 = arith.constant dense<0xFF800000> : vector<8xf32>
    %74 = vector.multi_reduction <maximumf>, %73, %cst_23 [1] : vector<8x8xf32> to vector<8xf32>
    %75 = vector.shape_cast %74 : vector<8xf32> to vector<8x1xf32>
    %76 = vector.broadcast %75 : vector<8x1xf32> to vector<8x8xf32>
    %77 = arith.subf %73, %76 : vector<8x8xf32>
    %78 = math.exp %77 : vector<8x8xf32>
    %79 = arith.mulf %78, %4 : vector<8x8xf32>
    %cst_24 = arith.constant dense<0.000000e+00> : vector<8x1xf32>
    %80 = tpu.matmul %79, %68, %cst_24 {dimension_numbers = #tpu.dot_dimension_numbers<[1], [0], [0], [1], [0, 0, 1, 1], [], []>} : vector<8x8xf32>, vector<8x1xf32>, vector<8x1xf32> -> vector<8x1xf32>
    %81 = vector.extract_strided_slice %66 {offsets = [0, 0], sizes = [8, 16], strides = [1, 1]} : vector<8x64xf32> to vector<8x16xf32>
    %cst_25 = arith.constant dense<0.000000e+00> : vector<8x16xf32>
    %82 = tpu.matmul %79, %81, %cst_25 {dimension_numbers = #tpu.dot_dimension_numbers<[1], [0], [0], [1], [0, 0, 1, 1], [], []>} : vector<8x8xf32>, vector<8x16xf32>, vector<8x16xf32> -> vector<8x16xf32>
    %83 = tpu.reciprocal %80 : vector<8x1xf32> -> vector<8x1xf32>
    %84 = vector.broadcast %83 : vector<8x1xf32> to vector<8x16xf32>
    %85 = arith.mulf %82, %84 : vector<8x16xf32>
    %86 = vector.extract_strided_slice %67 {offsets = [0, 0], sizes = [16, 64], strides = [1, 1]} : vector<64x64xf32> to vector<16x64xf32>
    %cst_26 = arith.constant dense<0.000000e+00> : vector<8x64xf32>
    %87 = tpu.matmul %85, %86, %cst_26 {dimension_numbers = #tpu.dot_dimension_numbers<[1], [0], [0], [1], [0, 0, 1, 1], [], []>} : vector<8x16xf32>, vector<16x64xf32>, vector<8x64xf32> -> vector<8x64xf32>
    %88 = arith.addf %70, %87 : vector<8x64xf32>
    %89 = vector.extract_strided_slice %64 {offsets = [0, 16], sizes = [8, 16], strides = [1, 1]} : vector<8x64xf32> to vector<8x16xf32>
    %90 = vector.extract_strided_slice %65 {offsets = [0, 16], sizes = [8, 16], strides = [1, 1]} : vector<8x64xf32> to vector<8x16xf32>
    %cst_27 = arith.constant dense<0.000000e+00> : vector<8x8xf32>
    %91 = tpu.matmul %89, %90, %cst_27 {dimension_numbers = #tpu.dot_dimension_numbers<[1], [1], [0], [0], [0, 0, 1, 0], [], []>} : vector<8x16xf32>, vector<8x16xf32>, vector<8x8xf32> -> vector<8x8xf32>
    %cst_28 = arith.constant dense<0xFF800000> : vector<8xf32>
    %92 = vector.multi_reduction <maximumf>, %91, %cst_28 [1] : vector<8x8xf32> to vector<8xf32>
    %93 = vector.shape_cast %92 : vector<8xf32> to vector<8x1xf32>
    %94 = vector.broadcast %93 : vector<8x1xf32> to vector<8x8xf32>
    %95 = arith.subf %91, %94 : vector<8x8xf32>
    %96 = math.exp %95 : vector<8x8xf32>
    %97 = arith.mulf %96, %4 : vector<8x8xf32>
    %cst_29 = arith.constant dense<0.000000e+00> : vector<8x1xf32>
    %98 = tpu.matmul %97, %68, %cst_29 {dimension_numbers = #tpu.dot_dimension_numbers<[1], [0], [0], [1], [0, 0, 1, 1], [], []>} : vector<8x8xf32>, vector<8x1xf32>, vector<8x1xf32> -> vector<8x1xf32>
    %99 = vector.extract_strided_slice %66 {offsets = [0, 16], sizes = [8, 16], strides = [1, 1]} : vector<8x64xf32> to vector<8x16xf32>
    %cst_30 = arith.constant dense<0.000000e+00> : vector<8x16xf32>
    %100 = tpu.matmul %97, %99, %cst_30 {dimension_numbers = #tpu.dot_dimension_numbers<[1], [0], [0], [1], [0, 0, 1, 1], [], []>} : vector<8x8xf32>, vector<8x16xf32>, vector<8x16xf32> -> vector<8x16xf32>
    %101 = tpu.reciprocal %98 : vector<8x1xf32> -> vector<8x1xf32>
    %102 = vector.broadcast %101 : vector<8x1xf32> to vector<8x16xf32>
    %103 = arith.mulf %100, %102 : vector<8x16xf32>
    %104 = vector.extract_strided_slice %67 {offsets = [16, 0], sizes = [16, 64], strides = [1, 1]} : vector<64x64xf32> to vector<16x64xf32>
    %cst_31 = arith.constant dense<0.000000e+00> : vector<8x64xf32>
    %105 = tpu.matmul %103, %104, %cst_31 {dimension_numbers = #tpu.dot_dimension_numbers<[1], [0], [0], [1], [0, 0, 1, 1], [], []>} : vector<8x16xf32>, vector<16x64xf32>, vector<8x64xf32> -> vector<8x64xf32>
    %106 = arith.addf %88, %105 : vector<8x64xf32>
    %107 = vector.extract_strided_slice %64 {offsets = [0, 32], sizes = [8, 16], strides = [1, 1]} : vector<8x64xf32> to vector<8x16xf32>
    %108 = vector.extract_strided_slice %65 {offsets = [0, 32], sizes = [8, 16], strides = [1, 1]} : vector<8x64xf32> to vector<8x16xf32>
    %cst_32 = arith.constant dense<0.000000e+00> : vector<8x8xf32>
    %109 = tpu.matmul %107, %108, %cst_32 {dimension_numbers = #tpu.dot_dimension_numbers<[1], [1], [0], [0], [0, 0, 1, 0], [], []>} : vector<8x16xf32>, vector<8x16xf32>, vector<8x8xf32> -> vector<8x8xf32>
    %cst_33 = arith.constant dense<0xFF800000> : vector<8xf32>
    %110 = vector.multi_reduction <maximumf>, %109, %cst_33 [1] : vector<8x8xf32> to vector<8xf32>
    %111 = vector.shape_cast %110 : vector<8xf32> to vector<8x1xf32>
    %112 = vector.broadcast %111 : vector<8x1xf32> to vector<8x8xf32>
    %113 = arith.subf %109, %112 : vector<8x8xf32>
    %114 = math.exp %113 : vector<8x8xf32>
    %115 = arith.mulf %114, %4 : vector<8x8xf32>
    %cst_34 = arith.constant dense<0.000000e+00> : vector<8x1xf32>
    %116 = tpu.matmul %115, %68, %cst_34 {dimension_numbers = #tpu.dot_dimension_numbers<[1], [0], [0], [1], [0, 0, 1, 1], [], []>} : vector<8x8xf32>, vector<8x1xf32>, vector<8x1xf32> -> vector<8x1xf32>
    %117 = vector.extract_strided_slice %66 {offsets = [0, 32], sizes = [8, 16], strides = [1, 1]} : vector<8x64xf32> to vector<8x16xf32>
    %cst_35 = arith.constant dense<0.000000e+00> : vector<8x16xf32>
    %118 = tpu.matmul %115, %117, %cst_35 {dimension_numbers = #tpu.dot_dimension_numbers<[1], [0], [0], [1], [0, 0, 1, 1], [], []>} : vector<8x8xf32>, vector<8x16xf32>, vector<8x16xf32> -> vector<8x16xf32>
    %119 = tpu.reciprocal %116 : vector<8x1xf32> -> vector<8x1xf32>
    %120 = vector.broadcast %119 : vector<8x1xf32> to vector<8x16xf32>
    %121 = arith.mulf %118, %120 : vector<8x16xf32>
    %122 = vector.extract_strided_slice %67 {offsets = [32, 0], sizes = [16, 64], strides = [1, 1]} : vector<64x64xf32> to vector<16x64xf32>
    %cst_36 = arith.constant dense<0.000000e+00> : vector<8x64xf32>
    %123 = tpu.matmul %121, %122, %cst_36 {dimension_numbers = #tpu.dot_dimension_numbers<[1], [0], [0], [1], [0, 0, 1, 1], [], []>} : vector<8x16xf32>, vector<16x64xf32>, vector<8x64xf32> -> vector<8x64xf32>
    %124 = arith.addf %106, %123 : vector<8x64xf32>
    %125 = vector.extract_strided_slice %64 {offsets = [0, 48], sizes = [8, 16], strides = [1, 1]} : vector<8x64xf32> to vector<8x16xf32>
    %126 = vector.extract_strided_slice %65 {offsets = [0, 48], sizes = [8, 16], strides = [1, 1]} : vector<8x64xf32> to vector<8x16xf32>
    %cst_37 = arith.constant dense<0.000000e+00> : vector<8x8xf32>
    %127 = tpu.matmul %125, %126, %cst_37 {dimension_numbers = #tpu.dot_dimension_numbers<[1], [1], [0], [0], [0, 0, 1, 0], [], []>} : vector<8x16xf32>, vector<8x16xf32>, vector<8x8xf32> -> vector<8x8xf32>
    %cst_38 = arith.constant dense<0xFF800000> : vector<8xf32>
    %128 = vector.multi_reduction <maximumf>, %127, %cst_38 [1] : vector<8x8xf32> to vector<8xf32>
    %129 = vector.shape_cast %128 : vector<8xf32> to vector<8x1xf32>
    %130 = vector.broadcast %129 : vector<8x1xf32> to vector<8x8xf32>
    %131 = arith.subf %127, %130 : vector<8x8xf32>
    %132 = math.exp %131 : vector<8x8xf32>
    %133 = arith.mulf %132, %4 : vector<8x8xf32>
    %cst_39 = arith.constant dense<0.000000e+00> : vector<8x1xf32>
    %134 = tpu.matmul %133, %68, %cst_39 {dimension_numbers = #tpu.dot_dimension_numbers<[1], [0], [0], [1], [0, 0, 1, 1], [], []>} : vector<8x8xf32>, vector<8x1xf32>, vector<8x1xf32> -> vector<8x1xf32>
    %135 = vector.extract_strided_slice %66 {offsets = [0, 48], sizes = [8, 16], strides = [1, 1]} : vector<8x64xf32> to vector<8x16xf32>
    %cst_40 = arith.constant dense<0.000000e+00> : vector<8x16xf32>
    %136 = tpu.matmul %133, %135, %cst_40 {dimension_numbers = #tpu.dot_dimension_numbers<[1], [0], [0], [1], [0, 0, 1, 1], [], []>} : vector<8x8xf32>, vector<8x16xf32>, vector<8x16xf32> -> vector<8x16xf32>
    %137 = tpu.reciprocal %134 : vector<8x1xf32> -> vector<8x1xf32>
    %138 = vector.broadcast %137 : vector<8x1xf32> to vector<8x16xf32>
    %139 = arith.mulf %136, %138 : vector<8x16xf32>
    %140 = vector.extract_strided_slice %67 {offsets = [48, 0], sizes = [16, 64], strides = [1, 1]} : vector<64x64xf32> to vector<16x64xf32>
    %cst_41 = arith.constant dense<0.000000e+00> : vector<8x64xf32>
    %141 = tpu.matmul %139, %140, %cst_41 {dimension_numbers = #tpu.dot_dimension_numbers<[1], [0], [0], [1], [0, 0, 1, 1], [], []>} : vector<8x16xf32>, vector<16x64xf32>, vector<8x64xf32> -> vector<8x64xf32>
    %142 = arith.addf %124, %141 : vector<8x64xf32>
    %c0_42 = arith.constant 0 : index
    %c0_43 = arith.constant 0 : index
    %143 = vector.load %arg8[%c0_42, %c0_43] : memref<8x64xf32, #tpu.memory_space<vmem>>, vector<8x64xf32>
    tpu.vector_store %arg8[%c0_42, %c0_43], %142 {strides = array<i32>} : memref<8x64xf32, #tpu.memory_space<vmem>>, vector<8x64xf32>,
    return
  }
  func.func @transform_0(%arg0: i32) -> (i32, i32) {
    %c0_i32 = arith.constant 0 : i32
    %c0_i32_0 = arith.constant 0 : i32
    return %arg0, %c0_i32 : i32, i32
  }
  func.func @transform_1(%arg0: i32) -> (i32, i32) {
    %c0_i32 = arith.constant 0 : i32
    %c0_i32_0 = arith.constant 0 : i32
    return %arg0, %c0_i32 : i32, i32
  }
  func.func @transform_2(%arg0: i32) -> (i32, i32) {
    %c0_i32 = arith.constant 0 : i32
    %c0_i32_0 = arith.constant 0 : i32
    %c0_i32_1 = arith.constant 0 : i32
    return %c0_i32, %c0_i32_0 : i32, i32
  }
  func.func @transform_3(%arg0: i32) -> (i32, i32) {
    %c0_i32 = arith.constant 0 : i32
    %c0_i32_0 = arith.constant 0 : i32
    %c0_i32_1 = arith.constant 0 : i32
    return %c0_i32, %c0_i32_0 : i32, i32
  }
  func.func @transform_4(%arg0: i32) -> (i32, i32) {
    %c0_i32 = arith.constant 0 : i32
    %c0_i32_0 = arith.constant 0 : i32
    %c0_i32_1 = arith.constant 0 : i32
    return %c0_i32, %c0_i32_0 : i32, i32
  }
  func.func @transform_5(%arg0: i32) -> (i32, i32) {
    %c0_i32 = arith.constant 0 : i32
    %c0_i32_0 = arith.constant 0 : i32
    %c0_i32_1 = arith.constant 0 : i32
    return %c0_i32, %c0_i32_0 : i32, i32
  }
  func.func @transform_6(%arg0: i32) -> (i32, i32) {
    %c0_i32 = arith.constant 0 : i32
    %c0_i32_0 = arith.constant 0 : i32
    %c0_i32_1 = arith.constant 0 : i32
    return %c0_i32, %c0_i32_0 : i32, i32
  }
  func.func @transform_7(%arg0: i32) -> (i32, i32) {
    %c0_i32 = arith.constant 0 : i32
    %c0_i32_0 = arith.constant 0 : i32
    return %arg0, %c0_i32 : i32, i32
  }
}

</mosaic_0001>

<bundles_post_ra>
// kernel: tpu_custom_call.1
= control target key start
LH: loop header
LB: loop body
LE: loop exit
PB: predicated region body
PF: predicated region fallthrough
CT: control target
= control target key end

     0   :  { %12 = vsyncpa [#allocation3], 0  ;;  %s2906_s0 = inlined_call_operand.vmem [shape: f32[16,64], index: 0, kind: input, shape index: {}]   ;;  %s2907_s1 = inlined_call_operand.vmem [shape: f32[16,2], index: 1, kind: input, shape index: {}]   ;;  %s2908_s2 = inlined_call_operand.hbm [shape: f32[8,8], index: 2, kind: input, shape index: {}]   ;;  %s2909_s3 = inlined_call_operand.hbm [shape: f32[32,64], index: 3, kind: input, shape index: {}]   ;;  %s2910_s4 = inlined_call_operand.hbm [shape: f32[64,192], index: 4, kind: input, shape index: {}]   ;;  %s2911_s5 = inlined_call_operand.hbm [shape: f32[64,64], index: 5, kind: input, shape index: {}]   ;;  %s2912_s6 = inlined_call_operand.hbm [shape: f32[8,192], index: 6, kind: input, shape index: {}]   ;;  %s2913_s7 = inlined_call_operand.hbm [shape: f32[16,64], index: 7, kind: output, shape index: {}]  }
   0x1   :  { %13 = vsyncpa [#allocation6], 0 }
   0x2   :  { %14 = vsyncpa [#allocation9], 0 }
   0x3   :  { %15 = vsyncpa [#allocation4], 0 }
   0x4   :  { %17 = vsyncpa [#allocation4 + $0x1], 0  ;;  %s2585_s24 = smov 0   ;;  %s2587_s25 = smov 0  }
   0x5   :  { %s2589_s26 = smov 0   ;;  %s2591_s27 = smov 0  }
   0x6 LB: > { %s2606_s28 = sadd.s32 4294967295, %s2521_s27   ;;  %s2004_s29 = sadd.s32 4294967294, %s2521_s27   ;;  %s2521_s27 = sphi %s2591_s27, %s2934_s27   ;;  %s2517_s26 = sphi %s2589_s26, %s2933_s26   ;;  %s2513_s25 = sphi %s2587_s25, %s2932_s25   ;;  %s2509_s24 = sphi %s2585_s24, %s2931_s24  }
   0x7   : > { %s2610_s30 = sadd.s32 1, %s2521_s27   ;;  %s187_s8 = sadd.s32 1, %s2517_s26 }
   0x8   : > { %s184_s9 = ssub.s32 %s2521_s27, %s2610_s30  ;;  %p197_p0 = scmp.ne.s32.totalorder %s2517_s26, %s2513_s25 }
   0x9   : > { %p185_p1 = scmp.eq.s32.totalorder %s184_s9, 0  ;;  %p198_p2 = scmp.eq.s32.totalorder %s2606_s28, 1 }
   0xa   : > { %p203_p3 = scmp.ne.s32.totalorder %s2513_s25, %s2509_s24  ;;  %p204_p4 = scmp.eq.s32.totalorder %s2004_s29, 1 }
   0xb   : > { %s2621_s10 = scalar_select %p185_p1, %s2517_s26, %s187_s8  }
   0xc   : > { %p2623_p5 = por %p198_p2, %p197_p0  ;;  %p2627_p6 = por %p204_p4, %p203_p3 }
   0xd   : > { %p2005_p7 = scmp.ge.s32.totalorder %s2521_s27, 1  ;;  %p211_p8 = scmp.lt.s32.totalorder %s2521_s27, 3 }
   0xe   : > { %s2917_s11 = scalar_select %p2623_p5, 1, 0 }
   0xf   : > { %s2918_s12 = scalar_select %p2627_p6, 1, 0 }
  0x10   : > { %p2914_p9 = scmp.eq.s32.totalorder %s2606_s28, 0  ;;  %p2634_p10 = pnand %p2005_p7, %p211_p8 }
  0x11   : > { %s2523_s14 = smov [#allocation5]   ;;  %s2524_s17 = smov [#allocation8]  }
  0x12   : > { %s2919_s13 = scalar_select %p2634_p10, 1, 0 }
  0x13   : > { %s234_s15 = sshll.u32 %s2523_s14, 4  ;;  %p2210_p11 = pneg %p2634_p10  ;;  %s235_s15 = int_to_ptr.vmem [resolvable:$true] %s234_s15 }
  0x14   : > { %s260_s18 = sshll.u32 %s2524_s17, 4  ;;  %s2525_s19 = smov [#allocation2]   ;;  %s261_s18 = int_to_ptr.vmem [resolvable:$true] %s260_s18 }
  0x15   : > { %p2642_p12 = pnand %p2914_p9, %p2210_p11  ;;  %s224_s20 = sshll.u32 %s2525_s19, 4  ;;  %s225_s20 = int_to_ptr.vmem [resolvable:$true] %s224_s20 }
  0x16   : > { %s2330_s22 = scalar_lea.vmem %s235_s15, 512  ;;  %p2338_p3 = scmp.lt.s32.totalorder %s235_s15, %s235_s15 }
  0x17   : > { %p2648_p13 = pneg %p2642_p12  ;;  %p2331_p0 = scmp.ne.s32.totalorder %s235_s15, %s2330_s22 }
  0x18   : > { %p2339_p4 = scmp.lt.s32.totalorder %s2330_s22, %s2330_s22 }
  0x19   : > { %p2333_p1 = pnand %p2331_p0, %p2648_p13 }
  0x1a   : > { %p2340_p7 = por %p2339_p4, %p2338_p3 }
  0x1b   : > { %p2334_p2 = pneg %p2333_p1 }
  0x1d   : > { %p2341_p8 = pnand %p2340_p7, %p2334_p2 }
  0x1f   : > { %2344 = shalt.err (!%p2341_p8)
}
  0x20   : > { %s2526_s23 = smov 128   ;;  %s2527_s29 = smov 8  }
  0x21   : > { %2216 = dma.hbm_to_vmem [thread:$0]  (!%p2642_p12), %s2909_s3, 512, %s235_s15, [#allocation6], %s2526_s23, %s2526_s23, %s2527_s29  }
  0x22   : > { %s2356_s14 = scalar_lea.vmem %s261_s18, 1024  ;;  %p2364_p1 = scmp.lt.s32.totalorder %s261_s18, %s261_s18 }
  0x23   : > { %p2357_p11 = scmp.ne.s32.totalorder %s261_s18, %s2356_s14  ;;  %p2365_p6 = scmp.lt.s32.totalorder %s2356_s14, %s2356_s14 }
  0x25   : > { %p2359_p9 = pnand %p2357_p11, %p2648_p13  ;;  %p2366_p5 = por %p2365_p6, %p2364_p1 }
  0x27   : > { %p2360_p0 = pneg %p2359_p9 }
  0x29   : > { %p2367_p3 = pnand %p2366_p5, %p2360_p0 }
  0x2b   : > { %2370 = shalt.err (!%p2367_p3)
}
  0x2c   : > { %2222 = dma.hbm_to_vmem [thread:$0]  (!%p2642_p12), %s2911_s5, 1024, %s261_s18, [#allocation9], %s2526_s23, %s2526_s23, %s2527_s29  }
  0x2d   : > { %s2382_s22 = scalar_lea.vmem %s225_s20, 128  ;;  %p2390_p8 = scmp.lt.s32.totalorder %s225_s20, %s225_s20 }
  0x2e   : > { %p2383_p2 = scmp.ne.s32.totalorder %s225_s20, %s2382_s22  ;;  %p2391_p9 = scmp.lt.s32.totalorder %s2382_s22, %s2382_s22 }
  0x30   : > { %p2385_p4 = pnand %p2383_p2, %p2648_p13  ;;  %p2392_p11 = por %p2391_p9, %p2390_p8 }
  0x32   : > { %p2386_p7 = pneg %p2385_p4 }
  0x34   : > { %p2393_p10 = pnand %p2392_p11, %p2386_p7 }
  0x36   : > { %2396 = shalt.err (!%p2393_p10)
}
  0x37   : > { %2213 = dma.hbm_to_vmem [thread:$0]  (!%p2642_p12), %s2908_s2, 128, %s225_s20, [#allocation3]  }
  0x38   : > { %s2528_s9 = smov [#allocation7]  }
  0x39   : > { %s247_s18 = sshll.u32 %s2528_s9, 4  ;;  %s248_s18 = int_to_ptr.vmem [resolvable:$true] %s247_s18 }
  0x3a   : > { %s2408_s23 = scalar_lea.vmem %s248_s18, 2048  ;;  %p2416_p1 = scmp.lt.s32.totalorder %s248_s18, %s248_s18 }
  0x3b   : > { %p2409_p5 = scmp.ne.s32.totalorder %s248_s18, %s2408_s23  ;;  %p2417_p3 = scmp.lt.s32.totalorder %s2408_s23, %s2408_s23 }
  0x3d   : > { %p2411_p6 = pnand %p2409_p5, %p2648_p13  ;;  %p2418_p2 = por %p2417_p3, %p2416_p1 }
  0x3f   : > { %p2412_p0 = pneg %p2411_p6 }
  0x41   : > { %p2419_p4 = pnand %p2418_p2, %p2412_p0 }
  0x43   : > { %2422 = shalt.err (!%p2419_p4)
}
  0x44   : > { %s2529_s29 = smov 256   ;;  %s2530_s14 = smov 16  }
  0x45   : > { %2219 = dma.hbm_to_vmem [thread:$0]  (!%p2642_p12), %s2910_s4, 2048, %s248_s18, [#allocation6], %s2529_s29, %s2529_s29, %s2530_s14  }
  0x46   : > { %s2531_s19 = smov [#allocation10]  }
  0x47   : > { %s274_s22 = sshll.u32 %s2531_s19, 4  ;;  %s275_s22 = int_to_ptr.vmem [resolvable:$true] %s274_s22 }
  0x48   : > { %s2434_s15 = scalar_lea.vmem %s275_s22, 256  ;;  %p2442_p9 = scmp.lt.s32.totalorder %s275_s22, %s275_s22 }
  0x49   : > { %p2435_p10 = scmp.ne.s32.totalorder %s275_s22, %s2434_s15  ;;  %p2443_p11 = scmp.lt.s32.totalorder %s2434_s15, %s2434_s15 }
  0x4b   : > { %p2437_p7 = pnand %p2435_p10, %p2648_p13  ;;  %p2444_p5 = por %p2443_p11, %p2442_p9 }
  0x4d   : > { %p2438_p8 = pneg %p2437_p7 }
  0x4f   : > { %p2445_p6 = pnand %p2444_p5, %p2438_p8 }
  0x51   : > { %2448 = shalt.err (!%p2445_p6)
}
  0x52   : > { %2225 = dma.hbm_to_vmem [thread:$0]  (!%p2642_p12), %s2912_s6, 256, %s275_s22, [#allocation9]  }
  0x53   : > { %p2922_p0 = scmp.ne.s32.totalorder %s2919_s13, 0 }
  0x54   : > { %p2923_p1 = scmp.eq.s32.totalorder (!%p2922_p0), %s2606_s28, 0 }
  0x55   : > { %301 = sbr.rel (%p2922_p0) target bundleno = 3021 (0xbcd), region = 48 }
  0x5a   : > { %2492 = dma.done.wait (%p2923_p1), [#allocation3], 128   ;;  %p2924_p13 = pmov %p2923_p1 }
  0x5b   : > { %p2925_p3 = pmov %p2923_p1 }
  0x5c   : > { %2494 = vsyncadd (%p2924_p13), [#allocation3], 4294967168 }
  0x5d   : > { %2496 = dma.done.wait (%p2925_p3), [#allocation6], 2560   ;;  %p2926_p2 = pmov %p2923_p1 }
  0x5e   : > { %p2927_p4 = pmov %p2923_p1 }
  0x5f   : > { %2498 = vsyncadd (%p2926_p2), [#allocation6], 4294964736 }
  0x60   : > { %2500 = dma.done.wait (%p2927_p4), [#allocation9], 1280   ;;  %p2928_p12 = pmov %p2923_p1 }
  0x61   : > { %p352_p10 = scmp.lt.s32.totalorder %s2606_s28, 1  ;;  %v370_v0 = vlaneseq  ;;  %v2532_v1 = vmov 0   ;;  %v2533_v4 = vmov 0.0   ;;  %v2716_v6 = vld [vmem:[#allocation10] sm:$0xff]  ;;  %v384_v8 = vld [vmem:[#allocation5 + $0x18] sm:$0xff]  ;;  %v383_v9 = vld [vmem:[#allocation5 + $0x10] sm:$0xff] }
  0x62   : > { %2502 = vsyncadd (%p2928_p12), [#allocation9], 4294966016  ;;  %2294 = vset.pattern.permute.xlu0 %v2532_v1  ;;  %2089 = vmatprep.subr.mxu0 %v2533_v4  ;;  %v382_v10 = vld [vmem:[#allocation5 + $0x8] sm:$0xff]  ;;  %vm2534_vm0 = vmmov 0   ;;  %s2535_s29 = smov 96   ;;  %v381_v11 = vld [vmem:[#allocation5] sm:$0xff] }
  0x63   : > { %s2703_s13 = scalar_select %p352_p10, %s2606_s28, 1  ;;  %v2705_v2 = vshrl.u32 %v370_v0, 7  ;;  %601 = vmatprep.mubr.f32.mxu1 %v2533_v4  ;;  %2090 = vmatpush3.msra.mxu0 %v384_v8  ;;  %vm389_vm1 = vcmask 261120   ;;  %vm463_vm2 = vcmask 523264   ;;  %v2536_v23 = vmov 1   ;;  %v525_v31 = vld [vmem:[#allocation7 + $0x78] sm:$0xff] }
  0x64   : > { %2091 = vmatprep.subr.mxu0 %v2533_v4  ;;  %2097 = vmatprep.mubr.msk.f32.mxu0 %vm2534_vm0, %v2533_v4  ;;  %s2537_s14 = smov 64   ;;  %v524_v32 = vld [vmem:[#allocation7 + $0x70] sm:$0xff]  ;;  %v523_v33 = vld [vmem:[#allocation7 + $0x68] sm:$0xff]  ;;  %v522_v34 = vld [vmem:[#allocation7 + $0x60] sm:$0xff]  ;;  %s2538_s22 = smov 48   ;;  %vm624_vm3 = vcmask 130048  }
  0x65   : > { %s2019_s16 = sshll.u32 %s2703_s13, 3  ;;  %v372_v3 = vsub.s32 0, %v2705_v2  ;;  %2092 = vmatpush3.msra.mxu0 %v383_v9  ;;  %v387_v17 = vsub.s32 1, %v2705_v2  ;;  %2295 = vset.pattern.permute.xlu1 %v2536_v23  ;;  %v495_v24 = vsub.s32 2, %v2705_v2  ;;  %v521_v35 = vld [vmem:[#allocation7 + $0x58] sm:$0xff]  ;;  %v520_v36 = vld [vmem:[#allocation7 + $0x50] sm:$0xff] }
  0x66   : > { %s359_s23 = scalar_lea.vmem %s2907_s1, %s2019_s16  ;;  %2093 = vmatprep.subr.mxu0 %v2533_v4  ;;  %553 = vmatprep.subr.mxu1 %v525_v31  ;;  %v519_v37 = vld [vmem:[#allocation7 + $0x48] sm:$0xff]  ;;  %v518_v38 = vld [vmem:[#allocation7 + $0x40] sm:$0xff]  ;;  %v517_v39 = vld [vmem:[#allocation7 + $0x38] sm:$0xff]  ;;  %s355_s19 = scalar_lea.vmem %s2906_s0, %s2019_s16  ;;  %vm699_vm4 = vcmask 64512  }
  0x67   : > { %v361_v5 = vld [vmem:[%s359_s23] sm:$0xff]  ;;  %v373_v7 = vrot.slane %v2716_v6, %v372_v3  ;;  %2094 = vmatpush3.msra.mxu0 %v382_v10  ;;  %v388_v18 = vrot.slane %v2716_v6, %v387_v17  ;;  %v496_v25 = vrot.slane %v2716_v6, %v495_v24  ;;  %554 = vmatpush1.msra.mxu1 %v524_v32  ;;  %v516_v40 = vld [vmem:[#allocation7 + $0x30] sm:$0xff]  ;;  %v515_v41 = vld [vmem:[#allocation7 + $0x28] sm:$0xff]  ;;  %s2539_s15 = smov 112   ;;  %s2540_s8 = smov 32  }
  0x68   : > { %367 = vperm.xlu0 %2294, %v361_v5   ;;  %2095 = vmatprep.subr.mxu0 %v2533_v4  ;;  %v514_v42 = vld [vmem:[#allocation7 + $0x20] sm:$0xff]  ;;  %v513_v43 = vld [vmem:[#allocation7 + $0x18] sm:$0xff]  ;;  %v512_v44 = vld [vmem:[#allocation7 + $0x10] sm:$0xff]  ;;  %s2542_s9 = smov 16   ;;  %s2543_s13 = smov 80  }
  0x69   : > { %2096 = vmatpush3.msra.mxu0 %v381_v11  ;;  %555 = vmatprep.subr.mxu1 %v523_v33  ;;  %v511_v45 = vld [vmem:[#allocation7 + $0x8] sm:$0xff]  ;;  %v510_v46 = vld [vmem:[#allocation7] sm:$0xff]  ;;  %v360_v63 = vld [vmem:[%s355_s19] sm:$0xff]  ;;  %s349_s16 = sand.u32 1, %s2513_s25   ;;  %s2045_s18 = sshll.u32 %s2606_s28, 7 }
  0x6a   : > { %2100 = vmatprep.subr.mxu0 %v2533_v4  ;;  %556 = vmatpush1.msra.mxu1 %v522_v34  ;;  %v2741_v57 = vld [vmem:[#allocation10 + $0x8] sm:$0xff]  ;;  %s2018_s21 = sshll.u32 %s349_s16, 3  ;;  %s2870_s20 = scalar_lea.hbm %s2913_s7, %s2045_s18 }
  0x6b   : > { %557 = vmatprep.subr.mxu1 %v521_v35  ;;  %v486_v61 = vrot.slane %v2741_v57, %v387_v17  ;;  %v2541_v17 = vmov 1.0   ;;  %s351_s23 = scalar_lea.vmem [#allocation11], %s2018_s21  ;;  %s1870_s19 = scalar_lea.sflag [#allocation4], %s349_s16 }
  0x6c   : > { %376 = vrot.lane.b32.xlu0 %v373_v7, %s2535_s29  ;;  %558 = vmatpush1.msra.mxu1 %v520_v36  ;;  %v608_v36 = vld [vmem:[#allocation8] sm:$0xff]  ;;  %p2929_p8 = scmp.ne.s32.totalorder %s2917_s11, 0  ;;  %s2544_s28 = smov [#allocation11]  }
  0x6d   : > { %559 = vmatprep.subr.mxu1 %v519_v37 }
  0x6e   : > { %560 = vmatpush1.msra.mxu1 %v518_v38 }
  0x6f   : > { %561 = vmatprep.subr.mxu1 %v517_v39 }
  0x70   : > { %562 = vmatpush1.msra.mxu1 %v516_v40 }
  0x71   : > { %563 = vmatprep.subr.mxu1 %v515_v41 }
  0x72   : > { %564 = vmatpush1.msra.mxu1 %v514_v42 }
  0x73   : > { %565 = vmatprep.subr.mxu1 %v513_v43 }
  0x74   : > { %566 = vmatpush1.msra.mxu1 %v512_v44 }
  0x75   : > { %567 = vmatprep.subr.mxu1 %v511_v45 }
  0x76   : > { %568 = vmatpush1.msra.mxu1 %v510_v46 }
  0x77   : > { %2115 = vmatprep.subr.mxu1 %v2533_v4 }
  0xe3   : > { %v368_v12 = vpop.permute.xlu0 %367 }
  0xe4   : > { %v374_v13 = vmul.f32 %v373_v7, %v368_v12  ;;  %v528_v7 = vsub.s32 3, %v2705_v2  ;;  %v610_v2 = vld [vmem:[#allocation8 + $0x10] sm:$0xff] }
  0xe6   : > { %v529_v8 = vrot.slane %v2716_v6, %v528_v7 }
  0xe7   : > { %v377_v14 = vpop.permute.xlu0 %376 }
  0xe8   : > { %v379_v15 = vadd.f32 %v377_v14, %v374_v13  ;;  %v533_v14 = vrot.slane %v2741_v57, %v528_v7 }
  0xea   : > { %v380_v16 = vmax.f32 %v379_v15, 0.0 }
  0xec   : > { %2098 = vmatmul.mubr.msk.f32.vlgmr.msra.gmra.mxu0 %vm389_vm1, %v380_v16 }
  0xed   : > { %2102 = vmatprep.mubr.msk.f32.mxu0 %vm2534_vm0, %v2533_v4 }
 0x1ac   : > { %v459_v19 = vpop.f32.mrf.mxu0 }
 0x1ad   : > { %v460_v20 = vadd.f32 %v459_v19, %v388_v18 }
 0x1ae   : > { %v2099_v21 = vpop.f32.mrf.mxu0 }
 0x1af   : > { %v464_v22 = vsel %vm463_vm2, %v460_v20, 0.0  ;;  %v2781_v21 = vld [vmem:[#allocation2] sm:$0xff] }
 0x1b0   : > { %465 = vadd.xlane.f32.xlu1 %v464_v22 }
 0x1c1   : > { %490 = vperm.xlu1 %2295, %v361_v5  }
 0x1c5   : > { %499 = vrot.lane.b32.xlu1 %v496_v25, %s2537_s14 }
 0x1c6   : > { %2296 = vset.pattern.permute.xlu1 %v2532_v1 }
 0x1c9   : > { %479 = vrot.lane.b32.xlu1 %v388_v18, %s2537_s14 }
 0x239   : > { %v466_v26 = vpop.xlane.xlu1 %465 }
 0x23a   : > { %v468_v27 = vmul.f32 0.015625, %v466_v26 }
 0x23c   : > { %v469_v28 = vsub.f32 %v460_v20, %v468_v27 }
 0x23d   : > { %v491_v47 = vpop.permute.xlu1 %490 }
 0x23e   : > { %v470_v29 = vmul.f32 %v469_v28, %v469_v28  ;;  %v497_v48 = vmul.f32 %v496_v25, %v491_v47 }
 0x240   : > { %v471_v30 = vsel %vm463_vm2, %v470_v29, 0.0 }
 0x241   : > { %472 = vadd.xlane.f32.xlu0 %v471_v30  ;;  %v500_v49 = vpop.permute.xlu1 %499 }
 0x242   : > { %v502_v50 = vadd.f32 %v500_v49, %v497_v48  ;;  %v619_v48 = vrot.slane %v2741_v57, %v495_v24 }
 0x244   : > { %v2022_v51 = vmul.f32 -1.442695, %v502_v50 }
 0x245   : > { %v480_v59 = vpop.permute.xlu1 %479 }
 0x246   : > { %2297 = vpow2.f32 %v2022_v51 }
 0x253   : > { %v2298_v55 = vpop.eup %2297 }
 0x254   : > { %v506_v56 = vadd.f32 1.0, %v2298_v55 }
 0x2ca   : > { %v473_v52 = vpop.xlane.xlu0 %472 }
 0x2cb   : > { %v474_v53 = vmul.f32 0.015625, %v473_v52 }
 0x2cd   : > { %v475_v54 = vadd.f32 1e-05, %v474_v53 }
 0x2cf   : > { %2299 = vrsqrt.f32 %v475_v54 }
 0x2d0   : > { %2301 = vrcp.f32 %v506_v56 }
 0x2dc   : > { %v2300_v58 = vpop.eup %2299 }
 0x2dd   : > { %v477_v60 = vmul.f32 %v2300_v58, %v469_v28  ;;  %v2302_v3 = vpop.eup %2301  ;;  %v609_v28 = vld [vmem:[#allocation8 + $0x8] sm:$0xff] }
 0x2df   : > { %v482_v62 = vmul.f32 %v480_v59, %v477_v60 }
 0x2e1   : > { %v487_v0 = vadd.f32 %v486_v61, %v482_v62  ;;  %v611_v61 = vld [vmem:[#allocation8 + $0x18] sm:$0xff] }
 0x2e3   : > { %v488_v1 = vadd.f32 %v487_v0, %v360_v63 }
 0x2e5   : > { %v2751_v5 = vmul.f32 %v2302_v3, %v488_v1 }
 0x2e7   : > { %2023 = vmatmul.mubr.msk.f32.vlgmr.msra.gmra.mxu1 %vm463_vm2, %v2751_v5  ;;  %v620_v49 = vadd.f32 %v619_v48, %v2751_v5 }
 0x2e8   : > { %2119 = vmatprep.mubr.msk.f32.mxu1 %vm2534_vm0, %v2533_v4  ;;  %2116 = vmatpush3.msra.mxu1 %v609_v28 }
 0x2e9   : > { %2117 = vmatprep.subr.mxu1 %v2533_v4 }
 0x2ea   : > { %2118 = vmatpush3.msra.mxu1 %v608_v36 }
 0x2eb   : > { %2127 = vmatprep.subr.mxu1 %v2533_v4 }
 0x3a7   : > { %v603_v9 = vpop.f32.mrf.mxu1 }
 0x3a8   : > { %v2759_v10 = vadd.f32 %v603_v9, %v529_v8  ;;  %v613_v9 = vld [vmem:[#allocation8 + $0x28] sm:$0xff] }
 0x3a9   : > { %v605_v15 = vpop.f32.mrf.mxu1 }
 0x3aa   : > { %933 = vrot.lane.b32.xlu0 %v2759_v10, %s2538_s22  ;;  %622 = vrot.lane.b32.xlu1 %v2759_v10, %s2537_s14  ;;  %v2773_v16 = vadd.f32 %v605_v15, %v533_v14 }
 0x3ae   : > { %931 = vrot.lane.b32.xlu0 %v2759_v10, %s2539_s15 }
 0x41c   : > { %v623_v11 = vpop.permute.xlu1 %622  ;;  %v934_v25 = vpop.permute.xlu0 %933 }
 0x41d   : > { %2101 = vmatpush3.xpose.msk.msra.mxu0 %vm624_vm3, %v623_v11 }
 0x41e   : > { %2105 = vmatprep.subr.mxu0 %v2533_v4 }
 0x420   : > { %2103 = vmatmul.mubr.msk.f32.vlgmr.msra.gmra.mxu0 %vm624_vm3, %v2759_v10  ;;  %v932_v26 = vpop.permute.xlu0 %931 }
 0x421   : > { %2107 = vmatprep.mubr.msk.f32.mxu0 %vm2534_vm0, %v2533_v4  ;;  %2106 = vmatpush3.msra.mxu0 %v2541_v17 }
 0x422   : > { %2110 = vmatprep.subr.mxu0 %v2533_v4 }
 0x4e0   : > { %v695_v6 = vpop.f32.mrf.mxu0 }
 0x4e1   : > { %v700_v12 = vsel %vm699_vm4, %v695_v6, -inf }
 0x4e2   : > { %701 = vmax.xlane.f32.xlu1 %v700_v12  ;;  %v2104_v13 = vpop.f32.mrf.mxu0 }
 0x4f3   : > { %1090 = vrot.lane.b32.xlu1 %v2773_v16, %s2539_s15  ;;  %s2453_s15 = sshll.u32 %s2544_s28, 4  ;;  %s2454_s15 = int_to_ptr.vmem [resolvable:$false] %s2453_s15 }
 0x4f7   : > { %1246 = vrot.lane.b32.xlu1 %v2759_v10, %s2540_s8  ;;  %s2455_s8 = scalar_lea.vmem %s2454_s15, 256 }
 0x4fb   : > { %1244 = vrot.lane.b32.xlu1 %v2759_v10, %s2535_s29 }
 0x56b   : > { %v702_v18 = vpop.xlane.xlu1 %701 }
 0x56c   : > { %v703_v19 = vsub.f32 %v695_v6, %v702_v18 }
 0x56e   : > { %v704_v20 = vmul.f32 1.442695, %v703_v19 }
 0x56f   : > { %v1091_v27 = vpop.permute.xlu1 %1090 }
 0x570   : > { %2303 = vpow2.f32 %v704_v20 }
 0x573   : > { %v1247_v38 = vpop.permute.xlu1 %1246 }
 0x577   : > { %v1245_v39 = vpop.permute.xlu1 %1244 }
 0x57d   : > { %v2304_v22 = vpop.eup %2303 }
 0x57e   : > { %v706_v23 = vmul.f32 %v2304_v22, %v2781_v21  ;;  %v612_v22 = vld [vmem:[#allocation8 + $0x20] sm:$0xff] }
 0x580   : > { %2108 = vmatmul.mubr.msk.f32.vlgmr.msra.gmra.mxu0 %vm699_vm4, %v706_v23 }
 0x581   : > { %2111 = vmatpush3.msra.mxu0 %v2773_v16  ;;  %2112 = vmatprep.mubr.msk.f32.mxu0 %vm2534_vm0, %v2533_v4 }
 0x582   : > { %2122 = vmatprep.subr.mxu0 %v2533_v4 }
 0x584   : > { %2113 = vmatmul.mubr.msk.f32.vlgmr.msra.gmra.mxu0 %vm699_vm4, %v706_v23 }
 0x585   : > { %2123 = vmatpush3.xpose.msk.msra.mxu0 %vm624_vm3, %v934_v25  ;;  %2124 = vmatprep.mubr.msk.f32.mxu0 %vm2534_vm0, %v2533_v4 }
 0x586   : > { %2132 = vmatprep.subr.mxu0 %v2533_v4 }
 0x588   : > { %2125 = vmatmul.mubr.msk.f32.vlgmr.msra.gmra.mxu0 %vm624_vm3, %v932_v26 }
 0x589   : > { %2133 = vmatpush3.msra.mxu0 %v1091_v27  ;;  %2134 = vmatprep.mubr.msk.f32.mxu0 %vm2534_vm0, %v2533_v4 }
 0x58a   : > { %2144 = vmatprep.subr.mxu0 %v2533_v4 }
 0x640   : > { %v776_v29 = vpop.f32.mrf.mxu0 }
 0x641   : > { %2305 = vrcp.f32 %v776_v29 }
 0x642   : > { %v2109_v30 = vpop.f32.mrf.mxu0 }
 0x644   : > { %v846_v31 = vpop.f32.mrf.mxu0 }
 0x646   : > { %v2114_v32 = vpop.f32.mrf.mxu0 }
 0x648   : > { %v1005_v33 = vpop.f32.mrf.mxu0 }
 0x649   : > { %v1009_v34 = vsel %vm699_vm4, %v1005_v33, -inf }
 0x64a   : > { %1010 = vmax.xlane.f32.xlu0 %v1009_v34  ;;  %v2126_v35 = vpop.f32.mrf.mxu0 }
 0x64e   : > { %v2306_v37 = vpop.eup %2305 }
 0x64f   : > { %853 = vperm.xlu1 %2296, %v2306_v37  }
 0x653   : > { %1402 = vrot.lane.b32.xlu1 %v2773_v16, %s2535_s29  ;;  %s1883_s29 = sshll.u32 %s351_s23, 4  ;;  %s1884_s29 = int_to_ptr.vmem [resolvable:$true] %s1883_s29 }
 0x654   : > { %s2449_s22 = scalar_lea.vmem %s1884_s29, 128  ;;  %p2456_p5 = scmp.lt.s32.totalorder %s1884_s29, %s2454_s15 }
 0x655   : > { %p2450_p7 = scmp.ne.s32.totalorder %s1884_s29, %s2449_s22  ;;  %p2457_p6 = scmp.lt.s32.totalorder %s2455_s8, %s2449_s22 }
 0x657   : > { %1558 = vrot.lane.b32.xlu1 %v2759_v10, %s2542_s9  ;;  %p2451_p9 = pnand %p2450_p7, %p2929_p8  ;;  %p2458_p0 = por %p2457_p6, %p2456_p5 }
 0x659   : > { %p2452_p11 = pneg %p2451_p9 }
 0x65b   : > { %1556 = vrot.lane.b32.xlu1 %v2759_v10, %s2543_s13  ;;  %p2459_p1 = pnand %p2458_p0, %p2452_p11 }
 0x6ca   : > { %v854_v40 = vpop.permute.xlu1 %853 }
 0x6cb   : > { %v856_v41 = vmul.f32 %v854_v40, %v846_v31 }
 0x6cd   : > { %2120 = vmatmul.mubr.msk.f32.vlgmr.msra.gmra.mxu1 %vm624_vm3, %v856_v41 }
 0x6ce   : > { %2128 = vmatpush3.msra.mxu1 %v2541_v17  ;;  %2129 = vmatprep.mubr.msk.f32.mxu1 %vm2534_vm0, %v2533_v4  ;;  %v1403_v47 = vpop.permute.xlu1 %1402 }
 0x6cf   : > { %2137 = vmatprep.subr.mxu1 %v2533_v4 }
 0x6d2   : > { %v1559_v5 = vpop.permute.xlu1 %1558 }
 0x6d3   : > { %v1011_v42 = vpop.xlane.xlu0 %1010 }
 0x6d4   : > { %v1012_v43 = vsub.f32 %v1005_v33, %v1011_v42 }
 0x6d6   : > { %v1013_v44 = vmul.f32 1.442695, %v1012_v43  ;;  %v1557_v8 = vpop.permute.xlu1 %1556 }
 0x6d8   : > { %2307 = vpow2.f32 %v1013_v44 }
 0x6e5   : > { %v2308_v45 = vpop.eup %2307 }
 0x6e6   : > { %v1015_v46 = vmul.f32 %v2308_v45, %v2781_v21 }
 0x6e8   : > { %2130 = vmatmul.mubr.msk.f32.vlgmr.msra.gmra.mxu1 %vm699_vm4, %v1015_v46  ;;  %2135 = vmatmul.mubr.msk.f32.vlgmr.msra.gmra.mxu0 %vm699_vm4, %v1015_v46 }
 0x6e9   : > { %2145 = vmatpush3.xpose.msk.msra.mxu0 %vm624_vm3, %v1247_v38  ;;  %2146 = vmatprep.mubr.msk.f32.mxu0 %vm2534_vm0, %v2533_v4  ;;  %v614_v38 = vld [vmem:[#allocation8 + $0x30] sm:$0xff] }
 0x6ea   : > { %2154 = vmatprep.subr.mxu0 %v2533_v4  ;;  %2141 = vmatprep.mubr.msk.f32.mxu1 %vm2534_vm0, %v2533_v4 }
 0x6eb   : > { %2138 = vmatpush3.msra.mxu1 %v611_v61 }
 0x6ec   : > { %2147 = vmatmul.mubr.msk.f32.vlgmr.msra.gmra.mxu0 %vm624_vm3, %v1245_v39  ;;  %2139 = vmatprep.subr.mxu1 %v2533_v4 }
 0x6ed   : > { %2155 = vmatpush3.msra.mxu0 %v1403_v47  ;;  %2156 = vmatprep.mubr.msk.f32.mxu0 %vm2534_vm0, %v2533_v4 }
 0x6ee   : > { %2166 = vmatprep.subr.mxu0 %v2533_v4  ;;  %2140 = vmatpush3.msra.mxu1 %v610_v2 }
 0x6ef   : > { %2149 = vmatprep.subr.mxu1 %v2533_v4 }
 0x78d   : > { %v926_v50 = vpop.f32.mrf.mxu1 }
 0x78e   : > { %v930_v51 = vadd.f32 %v926_v50, %v620_v49 }
 0x78f   : > { %v2121_v52 = vpop.f32.mrf.mxu1 }
 0x7a8   : > { %v1085_v53 = vpop.f32.mrf.mxu1  ;;  %v1159_v54 = vpop.f32.mrf.mxu0 }
 0x7a9   : > { %2309 = vrcp.f32 %v1085_v53 }
 0x7aa   : > { %v2131_v55 = vpop.f32.mrf.mxu1  ;;  %v2136_v56 = vpop.f32.mrf.mxu0 }
 0x7ac   : > { %v1318_v58 = vpop.f32.mrf.mxu0 }
 0x7ad   : > { %v1322_v59 = vsel %vm699_vm4, %v1318_v58, -inf }
 0x7ae   : > { %1323 = vmax.xlane.f32.xlu0 %v1322_v59  ;;  %v2148_v60 = vpop.f32.mrf.mxu0 }
 0x7b6   : > { %v2310_v24 = vpop.eup %2309 }
 0x7c4   : > { %1166 = vperm.xlu0 %2294, %v2310_v24  }
 0x837   : > { %v1324_v57 = vpop.xlane.xlu0 %1323 }
 0x838   : > { %v1325_v62 = vsub.f32 %v1318_v58, %v1324_v57 }
 0x83a   : > { %v1326_v63 = vmul.f32 1.442695, %v1325_v62 }
 0x83c   : > { %2311 = vpow2.f32 %v1326_v63 }
 0x83f   : > { %v1167_v0 = vpop.permute.xlu0 %1166 }
 0x840   : > { %v1169_v1 = vmul.f32 %v1167_v0, %v1159_v54 }
 0x842   : > { %2142 = vmatmul.mubr.msk.f32.vlgmr.msra.gmra.mxu1 %vm624_vm3, %v1169_v1 }
 0x843   : > { %2150 = vmatpush3.msra.mxu1 %v2541_v17  ;;  %2151 = vmatprep.mubr.msk.f32.mxu1 %vm2534_vm0, %v2533_v4 }
 0x844   : > { %2159 = vmatprep.subr.mxu1 %v2533_v4 }
 0x849   : > { %v2312_v3 = vpop.eup %2311 }
 0x84a   : > { %v1328_v7 = vmul.f32 %v2312_v3, %v2781_v21 }
 0x84c   : > { %2152 = vmatmul.mubr.msk.f32.vlgmr.msra.gmra.mxu1 %vm699_vm4, %v1328_v7  ;;  %2157 = vmatmul.mubr.msk.f32.vlgmr.msra.gmra.mxu0 %vm699_vm4, %v1328_v7 }
 0x84d   : > { %2167 = vmatpush3.xpose.msk.msra.mxu0 %vm624_vm3, %v1559_v5  ;;  %2168 = vmatprep.mubr.msk.f32.mxu0 %vm2534_vm0, %v2533_v4 }
 0x84e   : > { %2163 = vmatprep.mubr.msk.f32.mxu1 %vm2534_vm0, %v2533_v4  ;;  %2176 = vmatprep.subr.mxu0 %v2533_v4 }
 0x84f   : > { %2160 = vmatpush3.msra.mxu1 %v613_v9 }
 0x850   : > { %2169 = vmatmul.mubr.msk.f32.vlgmr.msra.gmra.mxu0 %vm624_vm3, %v1557_v8  ;;  %2161 = vmatprep.subr.mxu1 %v2533_v4 }
 0x851   : > { %2178 = vmatprep.mubr.msk.f32.mxu0 %vm2534_vm0, %v2533_v4  ;;  %2162 = vmatpush3.msra.mxu1 %v612_v22 }
 0x852   : > { %2171 = vmatprep.subr.mxu1 %v2533_v4 }
 0x902   : > { %v1239_v10 = vpop.f32.mrf.mxu1 }
 0x903   : > { %v1243_v11 = vadd.f32 %v1239_v10, %v930_v51 }
 0x904   : > { %v2143_v6 = vpop.f32.mrf.mxu1 }
 0x90c   : > { %v1398_v12 = vpop.f32.mrf.mxu1  ;;  %v1471_v13 = vpop.f32.mrf.mxu0 }
 0x90d   : > { %2313 = vrcp.f32 %v1398_v12 }
 0x90e   : > { %v2153_v14 = vpop.f32.mrf.mxu1  ;;  %v2158_v15 = vpop.f32.mrf.mxu0 }
 0x910   : > { %v1630_v18 = vpop.f32.mrf.mxu0 }
 0x911   : > { %v1634_v19 = vsel %vm699_vm4, %v1630_v18, -inf }
 0x912   : > { %1635 = vmax.xlane.f32.xlu1 %v1634_v19  ;;  %v2170_v20 = vpop.f32.mrf.mxu0 }
 0x91a   : > { %v2314_v23 = vpop.eup %2313 }
 0x91b   : > { %1478 = vperm.xlu0 %2294, %v2314_v23  }
 0x91f   : > { %1714 = vrot.lane.b32.xlu0 %v2773_v16, %s2543_s13 }
 0x996   : > { %v1479_v25 = vpop.permute.xlu0 %1478 }
 0x997   : > { %v1481_v26 = vmul.f32 %v1479_v25, %v1471_v13 }
 0x999   : > { %2164 = vmatmul.mubr.msk.f32.vlgmr.msra.gmra.mxu1 %vm624_vm3, %v1481_v26 }
 0x99a   : > { %v1715_v27 = vpop.permute.xlu0 %1714  ;;  %2172 = vmatpush3.msra.mxu1 %v2541_v17  ;;  %2173 = vmatprep.mubr.msk.f32.mxu1 %vm2534_vm0, %v2533_v4  ;;  %v615_v17 = vld [vmem:[#allocation8 + $0x38] sm:$0xff] }
 0x99b   : > { %2177 = vmatpush3.msra.mxu0 %v1715_v27  ;;  %v1636_v28 = vpop.xlane.xlu1 %1635  ;;  %2181 = vmatprep.subr.mxu1 %v2533_v4 }
 0x99c   : > { %v1637_v29 = vsub.f32 %v1630_v18, %v1636_v28 }
 0x99e   : > { %v1638_v30 = vmul.f32 1.442695, %v1637_v29 }
 0x9a0   : > { %2315 = vpow2.f32 %v1638_v30 }
 0x9ad   : > { %v2316_v31 = vpop.eup %2315 }
 0x9ae   : > { %v1640_v16 = vmul.f32 %v2316_v31, %v2781_v21 }
 0x9b0   : > { %2174 = vmatmul.mubr.msk.f32.vlgmr.msra.gmra.mxu1 %vm699_vm4, %v1640_v16  ;;  %2179 = vmatmul.mubr.msk.f32.vlgmr.msra.gmra.mxu0 %vm699_vm4, %v1640_v16 }
 0x9b1   : > { %2185 = vmatprep.mubr.msk.f32.mxu1 %vm2534_vm0, %v2533_v4  ;;  %2182 = vmatpush3.msra.mxu1 %v615_v17 }
 0x9b2   : > { %2183 = vmatprep.subr.mxu1 %v2533_v4 }
 0x9b3   : > { %2184 = vmatpush3.msra.mxu1 %v614_v38 }
 0xa59   : > { %v1551_v32 = vpop.f32.mrf.mxu1 }
 0xa5a   : > { %v1555_v33 = vadd.f32 %v1551_v32, %v1243_v11 }
 0xa5b   : > { %v2165_v34 = vpop.f32.mrf.mxu1 }
 0xa70   : > { %v1710_v35 = vpop.f32.mrf.mxu1  ;;  %v1783_v36 = vpop.f32.mrf.mxu0 }
 0xa71   : > { %2317 = vrcp.f32 %v1710_v35 }
 0xa72   : > { %v2175_v21 = vpop.f32.mrf.mxu1  ;;  %v2180_v37 = vpop.f32.mrf.mxu0 }
 0xa7e   : > { %v2318_v39 = vpop.eup %2317 }
 0xa7f   : > { %1790 = vperm.xlu0 %2294, %v2318_v39  }
 0xafa   : > { %v1791_v40 = vpop.permute.xlu0 %1790 }
 0xafb   : > { %v1793_v41 = vmul.f32 %v1791_v40, %v1783_v36 }
 0xafd   : > { %2186 = vmatmul.mubr.msk.f32.vlgmr.msra.gmra.mxu1 %vm624_vm3, %v1793_v41 }
 0xbbd   : > { %v1863_v4 = vpop.f32.mrf.mxu1 }
 0xbbe   : > { %v1867_v42 = vadd.f32 %v1863_v4, %v1555_v33 }
 0xbbf   : > { %v2187_v43 = vpop.f32.mrf.mxu1 }
 0xbc0   : > { %1868 = vst.msk [vmem:[%s351_s23] sm:$0xff] %vm463_vm2, %v1867_v42 }
 0xbc1   : > { %2462 = shalt.err (!%p2459_p1)
}
 0xbc2   : > { %s2463_s9 = scalar_lea.hbm %s2870_s20, 128  ;;  %s2467_s21 = scalar_lea.hbm %s2913_s7, 256 }
 0xbc3   : > { %p2464_p13 = scmp.ne.s32.totalorder %s2870_s20, %s2463_s9  ;;  %p2468_p4 = scmp.lt.s32.totalorder %s2870_s20, %s2913_s7 }
 0xbc4   : > { %p2469_p12 = scmp.lt.s32.totalorder %s2467_s21, %s2463_s9 }
 0xbc5   : > { %p2465_p3 = pnand %p2464_p13, %p2929_p8 }
 0xbc6   : > { %p2470_p10 = por %p2469_p12, %p2468_p4 }
 0xbc7   : > { %p2466_p2 = pneg %p2465_p3 }
 0xbc9   : > { %p2471_p7 = pnand %p2470_p10, %p2466_p2 }
 0xbcb   : > { %2474 = shalt.err (!%p2471_p7)
}
 0xbcc   : > { %2208 = dma.vmem_to_hbm [thread:$0]  (%p2929_p8), %s1884_s29, 128, %s2870_s20, %s1870_s19  }
 0xbcd PF: > { %p2240_p9 = scmp.ge.s32.totalorder %s2521_s27, 2  ;;  %s1895_s14 = sand.u32 1, %s2509_s24  }
 0xbce   : > { %p2930_p11 = scmp.ne.s32.totalorder %s2918_s12, 0  ;;  %s1896_s17 = scalar_lea.sflag [#allocation4], %s1895_s14 }
 0xbd0   : > { %p2227_p5 = pnand %p2240_p9, %p2930_p11 }
 0xbd2   : > { %p2228_p6 = pneg %p2227_p5 }
 0xbd4   : > { %2504 = dma.done.wait (%p2228_p6), %s1896_s17, 128  }
 0xbd5   : > { %2506 = vsyncadd (%p2228_p6), %s1896_s17, 4294967168  ;;  %p20_p0 = scmp.ge.s32.totalorder %s2610_s30, 4   ;;  %s2931_s24 = smov %s2513_s25 }
 0xbd6   : > { %s2932_s25 = smov %s2517_s26  ;;  %s2933_s26 = smov %s2621_s10 }
 0xbd7   : > { %s2934_s27 = smov %s2610_s30  ;;  %22 = sbr.rel (!%p20_p0) target bundleno = 6 (0x6), region = 107 }
 0xbdc   :  { %1901 = vsyncpa [#allocation3], 1 }
 0xbdd   :  { %1903 = vsyncpa [#allocation3 + $0x1], 1 }
 0xbde   :  { %1904 = vsyncpa [#allocation6], 1 }
 0xbdf   :  { %1905 = vsyncpa [#allocation9], 1 }
 0xbe0   :  { %1906 = vsyncpa [#allocation4], 1 }
 0xbe1   :  { %1908 = vsyncpa [#allocation4 + $0x1], 1 }

</bundles_post_ra>
